<compile_context>
chip_gen: v7x
topology: tpu7x:2x2x1
jax: 0.10.0
libtpu: 0.0.40
codegen_flags: <defaults>
</compile_context>

<pallas_src>
import jax
import jax.numpy as jnp
from jax.experimental import pallas as pl
from jax.experimental.pallas import tpu as pltpu


def _reparam_kernel(means_ref, std_ref, eps_ref, z_ref):
    # means_ref / std_ref: (1, W) resident rows; eps_ref / z_ref: (TILE, W).
    # Pure broadcast fused multiply-add on the VPU.
    z_ref[...] = means_ref[...] + std_ref[...] * eps_ref[...]


def variational_forward(means, log_std, epsilon, *, tile_rows=512):
    """z = means + exp(log_std) * epsilon  (reparameterization trick)."""
    n, d = epsilon.shape
    out_dtype = epsilon.dtype

    # Hoisted once per call (parameter preprocessing, not the hot path).
    means_v = means.astype(out_dtype)
    std_v = jnp.exp(log_std).astype(out_dtype)

    # ---- lane-dense folding: make the last dim a multiple of 128 ----------
    if d < 128 and 128 % d == 0:
        fold = 128 // d
        n_pad = ((n + fold - 1) // fold) * fold
        if n_pad != n:
            epsilon = jnp.pad(epsilon, ((0, n_pad - n), (0, 0)))
        rows, lane = n_pad // fold, 128
        eps2d = epsilon.reshape(rows, lane)
        means_row = jnp.tile(means_v, fold).reshape(1, lane)
        std_row = jnp.tile(std_v, fold).reshape(1, lane)
    else:
        fold, n_pad = 1, n
        rows, lane = n, d
        eps2d = epsilon
        means_row = means_v.reshape(1, lane)
        std_row = std_v.reshape(1, lane)

    # ---- tile the sample axis; params stay resident across the grid -------
    tile_r = min(tile_rows, rows)
    if tile_r < rows:
        tile_r = max(8, (tile_r // 8) * 8)  # (8, 128) alignment when tiled
    grid = (pl.cdiv(rows, tile_r),)

    z2d = pl.pallas_call(
        _reparam_kernel,
        out_shape=jax.ShapeDtypeStruct((rows, lane), out_dtype),
        grid=grid,
        in_specs=[
            pl.BlockSpec((1, lane), lambda i: (0, 0)),       # means (resident)
            pl.BlockSpec((1, lane), lambda i: (0, 0)),       # std   (resident)
            pl.BlockSpec((tile_r, lane), lambda i: (i, 0)),  # epsilon tile
        ],
        out_specs=pl.BlockSpec((tile_r, lane), lambda i: (i, 0)),
        compiler_params=pltpu.CompilerParams(
            dimension_semantics=("parallel",),
        ),
        # z may reuse epsilon's HBM buffer (XLA copies defensively otherwise).
        input_output_aliases={2: 0},
    )(means_row, std_row, eps2d)

    z = z2d.reshape(n_pad, d)
    if n_pad != n:
        z = z[:n]
    return z


def entropy(log_std):
    # Matches VariationalDistribution.entropy(): sum of log_std.
    return jnp.sum(log_std)


if __name__ == "__main__":
    # Shapes consistent with the module: D = tot_latent_dim * n_zs.
    tot_latent_dim = 8
    n_zs = 4
    D = tot_latent_dim * n_zs          # 32
    num_samps = 1024

    # Deterministic parameter init (mirrors __init__).
    means = jnp.zeros((D,), dtype=jnp.float32)
    log_std = -jnp.ones((D,), dtype=jnp.float32)

    # Deterministic standard-normal noise (torch.randn equivalent).
    key = jax.random.PRNGKey(0)
    epsilon = jax.random.normal(key, (num_samps, D), dtype=jnp.float32)

    # Reference computed up front (epsilon is conceptually donated to z).
    z_ref = means[None, :] + jnp.exp(log_std)[None, :] * epsilon

    # tile_rows=128 -> folded rows = 256 -> grid=(2,): exercises pipelining.
    z = variational_forward(means, log_std, epsilon, tile_rows=128)
    z = jax.block_until_ready(z)

    assert z.shape == (num_samps, D)
    assert jnp.allclose(z, z_ref, atol=1e-6, rtol=1e-6)

    # Also exercise the padded / partial-fold path (n not a multiple of 128//D).
    eps_small = jax.random.normal(jax.random.PRNGKey(1), (10, D), dtype=jnp.float32)
    z_small_ref = means[None, :] + jnp.exp(log_std)[None, :] * eps_small
    z_small = jax.block_until_ready(variational_forward(means, log_std, eps_small))
    assert z_small.shape == (10, D)
    assert jnp.allclose(z_small, z_small_ref, atol=1e-6, rtol=1e-6)

    # entropy() parity with the torch module.
    assert abs(float(entropy(log_std)) + D) < 1e-5

    print("KERNEL_OK")
</pallas_src>

<mosaic_0001>
module attributes {stable_mosaic.version = 11 : i64} {
  func.func @_reparam_kernel(%arg0: i32, %arg1: memref<1x128xf32, #tpu.memory_space<vmem>>, %arg2: memref<1x128xf32, #tpu.memory_space<vmem>>, %arg3: memref<128x128xf32, #tpu.memory_space<vmem>>, %arg4: memref<128x128xf32, #tpu.memory_space<vmem>>) attributes {dimension_semantics = [#tpu.dimension_semantics<parallel>], iteration_bounds = array<i64: 2>, scalar_prefetch = 0 : i64, scratch_operands = 0 : i64, tpu.core_type = #tpu.core_type<tc>, window_params = [{pipeline_mode = #tpu.pipeline_mode<synchronous>, transform_indices = @transform_0, window_bounds = array<i64: 1, 128>}, {pipeline_mode = #tpu.pipeline_mode<synchronous>, transform_indices = @transform_1, window_bounds = array<i64: 1, 128>}, {transform_indices = @transform_2, window_bounds = array<i64: 128, 128>}, {transform_indices = @transform_3, window_bounds = array<i64: 128, 128>}]} {
    %c0 = arith.constant 0 : index
    %c0_0 = arith.constant 0 : index
    %0 = vector.load %arg1[%c0, %c0_0] : memref<1x128xf32, #tpu.memory_space<vmem>>, vector<1x128xf32>
    %c0_1 = arith.constant 0 : index
    %c0_2 = arith.constant 0 : index
    %1 = vector.load %arg2[%c0_1, %c0_2] : memref<1x128xf32, #tpu.memory_space<vmem>>, vector<1x128xf32>
    %c0_3 = arith.constant 0 : index
    %c0_4 = arith.constant 0 : index
    %2 = vector.load %arg3[%c0_3, %c0_4] : memref<128x128xf32, #tpu.memory_space<vmem>>, vector<128x128xf32>
    %3 = vector.broadcast %1 : vector<1x128xf32> to vector<128x128xf32>
    %4 = arith.mulf %3, %2 : vector<128x128xf32>
    %5 = vector.broadcast %0 : vector<1x128xf32> to vector<128x128xf32>
    %6 = arith.addf %5, %4 : vector<128x128xf32>
    %c0_5 = arith.constant 0 : index
    %c0_6 = arith.constant 0 : index
    %7 = vector.load %arg4[%c0_5, %c0_6] : memref<128x128xf32, #tpu.memory_space<vmem>>, vector<128x128xf32>
    tpu.vector_store %arg4[%c0_5, %c0_6], %6 {strides = array<i32>} : memref<128x128xf32, #tpu.memory_space<vmem>>, vector<128x128xf32>,
    return
  }
  func.func @transform_0(%arg0: i32) -> (i32, i32) {
    %c0_i32 = arith.constant 0 : i32
    %c0_i32_0 = arith.constant 0 : i32
    %c0_i32_1 = arith.constant 0 : i32
    return %c0_i32, %c0_i32_0 : i32, i32
  }
  func.func @transform_1(%arg0: i32) -> (i32, i32) {
    %c0_i32 = arith.constant 0 : i32
    %c0_i32_0 = arith.constant 0 : i32
    %c0_i32_1 = arith.constant 0 : i32
    return %c0_i32, %c0_i32_0 : i32, i32
  }
  func.func @transform_2(%arg0: i32) -> (i32, i32) {
    %c0_i32 = arith.constant 0 : i32
    %c0_i32_0 = arith.constant 0 : i32
    return %arg0, %c0_i32 : i32, i32
  }
  func.func @transform_3(%arg0: i32) -> (i32, i32) {
    %c0_i32 = arith.constant 0 : i32
    %c0_i32_0 = arith.constant 0 : i32
    return %arg0, %c0_i32 : i32, i32
  }
}

</mosaic_0001>

<bundles_post_ra>
// kernel: tpu_custom_call.1
= control target key start
LH: loop header
LB: loop body
LE: loop exit
PB: predicated region body
PF: predicated region fallthrough
CT: control target
= control target key end

     0   :  { %8 = vsyncpa [#allocation3], 0  ;;  %s775_s0 = inlined_call_operand.vmem [shape: f32[1,128], index: 0, kind: input, shape index: {}]   ;;  %s776_s1 = inlined_call_operand.vmem [shape: f32[1,128], index: 1, kind: input, shape index: {}]   ;;  %s777_s2 = inlined_call_operand.hbm [shape: f32[256,128], index: 2, kind: input, shape index: {}, may-alias: {2,3}]   ;;  %s778_s3 = inlined_call_operand.hbm [shape: f32[256,128], index: 3, kind: output, shape index: {}, may-alias: {2,3}]  }
   0x1   :  { %10 = vsyncpa [#allocation3 + $0x1], 0 }
   0x2   :  { %11 = vsyncpa [#allocation4], 0 }
   0x3   :  { %13 = vsyncpa [#allocation4 + $0x1], 0  ;;  %s548_s12 = smov 0   ;;  %s550_s13 = smov 0  }
   0x4   :  { %s552_s14 = smov 0   ;;  %s554_s15 = smov 0  }
   0x5 LB: > { %s569_s16 = sadd.s32 4294967295, %s520_s15   ;;  %s356_s17 = sadd.s32 4294967294, %s520_s15   ;;  %s520_s15 = sphi %s554_s15, %s791_s15   ;;  %s516_s14 = sphi %s552_s14, %s790_s14   ;;  %s512_s13 = sphi %s550_s13, %s789_s13   ;;  %s508_s12 = sphi %s548_s12, %s788_s12  }
   0x6   : > { %s573_s18 = sadd.s32 1, %s520_s15   ;;  %s68_s19 = sadd.s32 1, %s516_s14 }
   0x7   : > { %s65_s20 = ssub.s32 %s520_s15, %s573_s18  ;;  %p75_p0 = scmp.ne.s32.totalorder %s516_s14, %s512_s13 }
   0x8   : > { %p66_p1 = scmp.eq.s32.totalorder %s65_s20, 0  ;;  %p76_p2 = scmp.eq.s32.totalorder %s520_s15, 0 }
   0x9   : > { %p81_p3 = scmp.ne.s32.totalorder %s512_s13, %s508_s12  ;;  %p82_p4 = scmp.eq.s32.totalorder %s569_s16, 0 }
   0xa   : > { %s585_s21 = scalar_select %p66_p1, %s516_s14, %s68_s19  }
   0xb   : > { %p587_p5 = por %p76_p2, %p75_p0  ;;  %p591_p6 = por %p82_p4, %p81_p3 }
   0xc   : > { %p105_p7 = scmp.eq.s32.totalorder %s569_s16, 1  ;;  %p111_p8 = scmp.eq.s32.totalorder %s356_s17, 1 }
   0xd   : > { %p386_p10 = scmp.lt.s32.totalorder %s520_s15, 2  ;;  %s137_s26 = sand.u32 1, %s516_s14  }
   0xe   : > { %p598_p11 = por %p105_p7, %p75_p0  ;;  %p602_p12 = por %p111_p8, %p81_p3 }
   0xf   : > { %s372_s27 = sshll.u32 %s520_s15, 11  ;;  %s359_s28 = sshll.u32 %s137_s26, 7 }
  0x10   : > { %s782_s24 = scalar_select %p598_p11, 1, 0 }
  0x11   : > { %s783_s25 = scalar_select %p602_p12, 1, 0 }
  0x12   : > { %s611_s4 = scalar_lea.hbm %s777_s2, %s372_s27  ;;  %s141_s5 = scalar_lea.vmem [#allocation2], %s359_s28 }
  0x13   : > { %s148_s6 = sshll.u32 %s141_s5, 4  ;;  %p615_p13 = pnand %p386_p10, %p587_p5  ;;  %s619_s6 = int_to_ptr.vmem [resolvable:$true] %s148_s6 }
  0x14   : > { %s621_s8 = scalar_lea.sflag [#allocation3], %s137_s26  ;;  %s424_s9 = scalar_lea.hbm %s611_s4, 2048 }
  0x15   : > { %p425_p0 = scmp.ne.s32.totalorder %s611_s4, %s424_s9  ;;  %p426_p1 = pneg %p615_p13 }
  0x16   : > { %s429_s17 = scalar_lea.hbm %s777_s2, 4096  ;;  %p430_p4 = scmp.lt.u32.totalorder %s611_s4, %s777_s2 }
  0x17   : > { %p427_p2 = pnand %p426_p1, %p425_p0  ;;  %p431_p5 = scmp.lt.u32.totalorder %s429_s17, %s424_s9 }
  0x18   : > { %p433_p8 = scmp.lt.u32.totalorder %s424_s9, %s611_s4 }
  0x19   : > { %p428_p3 = pneg %p427_p2  ;;  %p432_p7 = por %p431_p5, %p430_p4 }
  0x1b   : > { %p434_p10 = por %p433_p8, %p432_p7 }
  0x1d   : > { %p435_p9 = pnand %p434_p10, %p428_p3 }
  0x1f   : > { %438 = shalt.err (!%p435_p9)
}
  0x20   : > { %s439_s22 = scalar_lea.vmem %s619_s6, 2048  ;;  %s522_s26 = smov [#allocation2]  }
  0x21   : > { %p440_p0 = scmp.ne.s32.totalorder %s619_s6, %s439_s22  ;;  %s444_s27 = sshll.u32 %s522_s26, 4  ;;  %s445_s27 = int_to_ptr.vmem [resolvable:$false] %s444_s27 }
  0x22   : > { %s446_s28 = scalar_lea.vmem %s445_s27, 4096  ;;  %p447_p11 = scmp.lt.s32.totalorder %s619_s6, %s445_s27 }
  0x23   : > { %p442_p2 = pnand %p440_p0, %p426_p1  ;;  %p448_p4 = scmp.lt.s32.totalorder %s446_s28, %s439_s22 }
  0x25   : > { %p443_p12 = pneg %p442_p2  ;;  %p449_p5 = por %p448_p4, %p447_p11 }
  0x27   : > { %p450_p7 = pnand %p449_p5, %p443_p12 }
  0x29   : > { %453 = shalt.err (!%p450_p7)
}
  0x2a   : > { %s523_s29 = smov 128   ;;  %s524_s30 = smov 8  }
  0x2b   : > { %381 = dma.hbm_to_vmem [thread:$0]  (!%p615_p13), %s611_s4, 2048, %s619_s6, %s621_s8, %s523_s29, %s523_s29, %s524_s30  }
  0x2c   : > { %p362_p9 = scmp.ge.s32.totalorder %s520_s15, 1  ;;  %p156_p1 = scmp.lt.s32.totalorder %s520_s15, 3 }
  0x2e   : > { %p157_p3 = pnand %p362_p9, %p156_p1 }
  0x2f   : > { %s652_s5 = sand.u32 (!%p157_p3), 1, %s512_s13  }
  0x30   : > { %160 = sbr.rel (%p157_p3) target bundleno = 85 (0x55), region = 32  ;;  %s363_s9 = sshll.u32 (!%p157_p3), %s652_s5, 7 }
  0x31   : > { %s163_s10 = scalar_lea.sflag (!%p157_p3), [#allocation3], %s652_s5  ;;  %s658_s11 = scalar_lea.vmem (!%p157_p3), [#allocation2], %s363_s9 }
  0x37   : > { %499 = dma.done.wait (%p591_p6), %s163_s10, 2048  }
  0x38   : > { %501 = vsyncadd (%p591_p6), %s163_s10, 4294965248  ;;  %v667_v0 = vld [vmem:[%s775_s0] ss:$0 sm:$0xff]  ;;  %v194_v4 = vld [vmem:[%s658_s11 + $0x8] sm:$0xff]  ;;  %s691_s23 = scalar_lea.vmem [#allocation5], %s363_s9  ;;  %s373_s17 = sshll.u32 %s569_s16, 11 }
  0x39   : > { %v365_v1 = vld [vmem:[%s776_s1] ss:$0 sm:$0xff]  ;;  %v195_v5 = vld [vmem:[%s658_s11 + $0x10] sm:$0xff]  ;;  %v196_v6 = vld [vmem:[%s658_s11 + $0x18] sm:$0xff]  ;;  %s283_s19 = sshll.u32 %s691_s23, 4  ;;  %s721_s22 = scalar_lea.hbm %s778_s3, %s373_s17  ;;  %s723_s19 = int_to_ptr.vmem [resolvable:$true] %s283_s19 }
  0x3a   : > { %v193_v2 = vld [vmem:[%s658_s11] sm:$0xff]  ;;  %v216_v7 = vmul.f32 %v365_v1, %v194_v4  ;;  %v217_v8 = vmul.f32 %v365_v1, %v195_v5  ;;  %v218_v9 = vmul.f32 %v365_v1, %v196_v6  ;;  %v198_v11 = vld [vmem:[%s658_s11 + $0x28] sm:$0xff]  ;;  %v199_v12 = vld [vmem:[%s658_s11 + $0x30] sm:$0xff]  ;;  %s270_s26 = scalar_lea.sflag [#allocation4], %s652_s5  ;;  %s454_s27 = scalar_lea.vmem %s723_s19, 2048 }
  0x3b   : > { %v215_v3 = vmul.f32 %v365_v1, %v193_v2  ;;  %v197_v10 = vld [vmem:[%s658_s11 + $0x20] sm:$0xff]  ;;  %v220_v15 = vmul.f32 %v365_v1, %v198_v11  ;;  %v221_v16 = vmul.f32 %v365_v1, %v199_v12  ;;  %v200_v17 = vld [vmem:[%s658_s11 + $0x38] sm:$0xff]  ;;  %v202_v19 = vld [vmem:[%s658_s11 + $0x48] sm:$0xff]  ;;  %p455_p6 = scmp.ne.s32.totalorder %s723_s19, %s454_s27  ;;  %p785_p11 = scmp.ne.s32.totalorder %s782_s24, 0 }
  0x3c   : > { %v219_v14 = vmul.f32 %v365_v1, %v197_v10  ;;  %v201_v18 = vld [vmem:[%s658_s11 + $0x40] sm:$0xff]  ;;  %v238_v20 = vadd.f32 %v667_v0, %v216_v7  ;;  %v239_v21 = vadd.f32 %v667_v0, %v217_v8  ;;  %v240_v22 = vadd.f32 %v667_v0, %v218_v9  ;;  %v203_v24 = vld [vmem:[%s658_s11 + $0x50] sm:$0xff]  ;;  %v204_v25 = vld [vmem:[%s658_s11 + $0x58] sm:$0xff]  ;;  %s525_s28 = smov [#allocation5]  }
  0x3d   : > { %v237_v13 = vadd.f32 %v667_v0, %v215_v3  ;;  %v222_v23 = vmul.f32 %v365_v1, %v200_v17  ;;  %v205_v26 = vld [vmem:[%s658_s11 + $0x60] sm:$0xff]  ;;  %v242_v28 = vadd.f32 %v667_v0, %v220_v15  ;;  %v243_v29 = vadd.f32 %v667_v0, %v221_v16  ;;  %v206_v31 = vld [vmem:[%s658_s11 + $0x68] sm:$0xff]  ;;  %v207_v32 = vld [vmem:[%s658_s11 + $0x70] sm:$0xff]  ;;  %p456_p12 = pnand %p455_p6, %p785_p11  ;;  %s458_s29 = sshll.u32 %s525_s28, 4  ;;  %s459_s29 = int_to_ptr.vmem [resolvable:$false] %s458_s29 }
  0x3e   : > { %v241_v27 = vadd.f32 %v667_v0, %v219_v14  ;;  %v223_v30 = vmul.f32 %v365_v1, %v201_v18  ;;  %v208_v33 = vld [vmem:[%s658_s11 + $0x78] sm:$0xff]  ;;  %254 = vst [vmem:[%s691_s23 + $0x8] sm:$0xff] %v238_v20  ;;  %255 = vst [vmem:[%s691_s23 + $0x10] sm:$0xff] %v239_v21  ;;  %v224_v35 = vmul.f32 %v365_v1, %v202_v19  ;;  %s460_s30 = scalar_lea.vmem %s459_s29, 4096  ;;  %p461_p8 = scmp.lt.s32.totalorder %s723_s19, %s459_s29 }
  0x3f   : > { %253 = vst [vmem:[%s691_s23] sm:$0xff] %v237_v13  ;;  %256 = vst [vmem:[%s691_s23 + $0x18] sm:$0xff] %v240_v22  ;;  %v244_v34 = vadd.f32 %v667_v0, %v222_v23  ;;  %v225_v36 = vmul.f32 %v365_v1, %v203_v24  ;;  %v226_v37 = vmul.f32 %v365_v1, %v204_v25  ;;  %p457_p13 = pneg %p456_p12  ;;  %p462_p10 = scmp.lt.s32.totalorder %s460_s30, %s454_s27 }
  0x40   : > { %257 = vst [vmem:[%s691_s23 + $0x20] sm:$0xff] %v241_v27  ;;  %258 = vst [vmem:[%s691_s23 + $0x28] sm:$0xff] %v242_v28  ;;  %v245_v38 = vadd.f32 %v667_v0, %v223_v30  ;;  %v227_v39 = vmul.f32 %v365_v1, %v205_v26  ;;  %v228_v40 = vmul.f32 %v365_v1, %v206_v31 }
  0x41   : > { %259 = vst [vmem:[%s691_s23 + $0x30] sm:$0xff] %v243_v29  ;;  %v229_v41 = vmul.f32 %v365_v1, %v207_v32  ;;  %260 = vst [vmem:[%s691_s23 + $0x38] sm:$0xff] %v244_v34  ;;  %v246_v42 = vadd.f32 %v667_v0, %v224_v35  ;;  %v247_v43 = vadd.f32 %v667_v0, %v225_v36  ;;  %p463_p0 = por %p462_p10, %p461_p8 }
  0x42   : > { %v248_v44 = vadd.f32 %v667_v0, %v226_v37  ;;  %v230_v45 = vmul.f32 %v365_v1, %v208_v33  ;;  %261 = vst [vmem:[%s691_s23 + $0x40] sm:$0xff] %v245_v38  ;;  %v249_v46 = vadd.f32 %v667_v0, %v227_v39  ;;  %v250_v47 = vadd.f32 %v667_v0, %v228_v40 }
  0x43   : > { %v251_v48 = vadd.f32 %v667_v0, %v229_v41  ;;  %262 = vst [vmem:[%s691_s23 + $0x48] sm:$0xff] %v246_v42  ;;  %263 = vst [vmem:[%s691_s23 + $0x50] sm:$0xff] %v247_v43  ;;  %p464_p2 = pnand %p463_p0, %p457_p13 }
  0x44   : > { %264 = vst [vmem:[%s691_s23 + $0x58] sm:$0xff] %v248_v44  ;;  %v252_v49 = vadd.f32 %v667_v0, %v230_v45  ;;  %265 = vst [vmem:[%s691_s23 + $0x60] sm:$0xff] %v249_v46 }
  0x45   : > { %266 = vst [vmem:[%s691_s23 + $0x68] sm:$0xff] %v250_v47  ;;  %267 = vst [vmem:[%s691_s23 + $0x70] sm:$0xff] %v251_v48 }
  0x46   : > { %268 = vst [vmem:[%s691_s23 + $0x78] sm:$0xff] %v252_v49 }
  0x47   : > { %467 = shalt.err (!%p464_p2)
}
  0x48   : > { %s468_s9 = scalar_lea.hbm %s721_s22, 2048  ;;  %s472_s4 = scalar_lea.hbm %s778_s3, 4096 }
  0x49   : > { %p469_p4 = scmp.ne.s32.totalorder %s721_s22, %s468_s9  ;;  %p473_p9 = scmp.lt.u32.totalorder %s721_s22, %s778_s3 }
  0x4a   : > { %p474_p1 = scmp.lt.u32.totalorder %s472_s4, %s468_s9  ;;  %p476_p6 = scmp.lt.u32.totalorder %s468_s9, %s721_s22 }
  0x4b   : > { %p470_p5 = pnand %p469_p4, %p785_p11 }
  0x4c   : > { %p475_p3 = por %p474_p1, %p473_p9 }
  0x4d   : > { %p471_p7 = pneg %p470_p5 }
  0x4e   : > { %p477_p12 = por %p476_p6, %p475_p3 }
  0x50   : > { %p478_p13 = pnand %p477_p12, %p471_p7 }
  0x52   : > { %481 = shalt.err (!%p478_p13)
}
  0x53   : > { %s526_s8 = smov 128   ;;  %s527_s23 = smov 8  }
  0x54   : > { %376 = dma.vmem_to_hbm [thread:$0]  (%p785_p11), %s723_s19, 2048, %s721_s22, %s270_s26, %s526_s8, %s526_s8, %s527_s23  }
  0x55 PF: > { %s298_s17 = sand.u32 1, %s508_s12   ;;  %p786_p8 = scmp.ne.s32.totalorder %s783_s25, 0 }
  0x56   : > { %p787_p10 = scmp.ge.s32.totalorder %s520_s15, 2  ;;  %s299_s16 = scalar_lea.sflag [#allocation4], %s298_s17 }
  0x58   : > { %p383_p0 = pnand %p787_p10, %p786_p8 }
  0x5a   : > { %503 = dma.done.wait (!%p383_p0), %s299_s16, 2048  }
  0x5b   : > { %505 = vsyncadd (!%p383_p0), %s299_s16, 4294965248  ;;  %p16_p2 = scmp.ge.s32.totalorder %s573_s18, 4   ;;  %s788_s12 = smov %s512_s13 }
  0x5c   : > { %s789_s13 = smov %s516_s14  ;;  %s790_s14 = smov %s585_s21 }
  0x5d   : > { %s791_s15 = smov %s573_s18  ;;  %18 = sbr.rel (!%p16_p2) target bundleno = 5 (0x5), region = 77 }
  0x64   :  { %304 = vsyncpa [#allocation3], 1 }
  0x65   :  { %306 = vsyncpa [#allocation3 + $0x1], 1 }
  0x66   :  { %307 = vsyncpa [#allocation4], 1 }
  0x67   :  { %309 = vsyncpa [#allocation4 + $0x1], 1 }

</bundles_post_ra>
